<compile_context>
chip_gen: v5e
topology: v5e:2x2
jax: 0.10.0
libtpu: 0.0.40
codegen_flags: <defaults>
</compile_context>

<pallas_src>
import jax
import jax.numpy as jnp
from jax import lax
from jax.experimental import pallas as pl
from jax.experimental.pallas import tpu as pltpu

N, CIN, COUT, H, W = 1, 96, 2304, 1, 1


def conv1x1_sigmoid_kernel(x_ref, w_ref, b_ref, o_ref):
    # x_ref: (M, CIN) bf16   w_ref: (TN, CIN) bf16 (untransposed weight tile)
    # b_ref: (1, TN) f32     o_ref: (M, TN) f32
    acc = lax.dot_general(
        x_ref[...], w_ref[...],
        dimension_numbers=(((1,), (1,)), ((), ())),   # contract over CIN
        preferred_element_type=jnp.float32,
    )
    o_ref[...] = jax.nn.sigmoid(acc + b_ref[...]).astype(o_ref.dtype)


def conv1x1_sigmoid(x_nchw, weight, bias, num_cout_blocks=1):
    """x_nchw: (N, CIN, H, W); weight: (COUT, CIN, 1, 1); bias: (COUT,)."""
    n, cin, h, w = x_nchw.shape
    cout = weight.shape[0]
    m = n * h * w
    assert cout % num_cout_blocks == 0
    tn = cout // num_cout_blocks

    # NCHW -> (N*H*W, Cin); bf16 inputs to halve the dominant HBM weight read.
    x2d = jnp.transpose(x_nchw, (0, 2, 3, 1)).reshape(m, cin).astype(jnp.bfloat16)
    w2d = weight.reshape(cout, cin).astype(jnp.bfloat16)   # (Cout, Cin) — no transpose
    b2d = bias.reshape(1, cout).astype(jnp.float32)        # (1, Cout)

    cost = pl.CostEstimate(
        flops=2 * m * cin * cout,
        transcendentals=m * cout,
        bytes_accessed=(x2d.size * 2 + w2d.size * 2 + b2d.size * 4 + m * cout * 4),
    )

    y2d = pl.pallas_call(
        conv1x1_sigmoid_kernel,
        out_shape=jax.ShapeDtypeStruct((m, cout), jnp.float32),
        grid=(num_cout_blocks,),
        in_specs=[
            pl.BlockSpec((m, cin), lambda j: (0, 0)),    # tiny x, full each step
            pl.BlockSpec((tn, cin), lambda j: (j, 0)),   # weight row tile (Cout-split)
            pl.BlockSpec((1, tn), lambda j: (0, j)),     # bias tile
        ],
        out_specs=pl.BlockSpec((m, tn), lambda j: (0, j)),
        compiler_params=pltpu.CompilerParams(
            dimension_semantics=("parallel",),
        ),
        cost_estimate=cost,
    )(x2d, w2d, b2d)

    # (N*H*W, Cout) -> NCHW, back in the input dtype.
    return jnp.transpose(y2d.reshape(n, h, w, cout), (0, 3, 1, 2)).astype(x_nchw.dtype)


def _cout_blocks_for_device():
    # v7x has 2 TensorCores per chip -> split Cout 2 ways; 1 step elsewhere.
    try:
        kind = jax.devices()[0].device_kind.lower()
    except Exception:
        return 1
    return 2 if ("v7" in kind or "7x" in kind) else 1


if __name__ == "__main__":
    key = jax.random.PRNGKey(0)
    kx, kw, kb = jax.random.split(key, 3)

    x = jax.random.normal(kx, (N, CIN, H, W), dtype=jnp.float32)
    # Deterministic parameter init (shapes from Conv2d(96, 2304, kernel_size=1)).
    fan_in = CIN  # * 1 * 1
    bound = 1.0 / jnp.sqrt(fan_in)
    weight = jax.random.uniform(kw, (COUT, CIN, 1, 1), minval=-bound, maxval=bound,
                                dtype=jnp.float32)
    bias = jax.random.uniform(kb, (COUT,), minval=-bound, maxval=bound,
                              dtype=jnp.float32)

    out = conv1x1_sigmoid(x, weight, bias, num_cout_blocks=_cout_blocks_for_device())
    out = jax.block_until_ready(out)

    # Reference check in plain JAX (f32). bf16 inputs -> loosened tolerance.
    ref = jax.nn.sigmoid(
        jnp.einsum("nchw,oc->nohw", x, weight.reshape(COUT, CIN))
        + bias.reshape(1, COUT, 1, 1)
    )
    assert out.shape == (N, COUT, H, W), out.shape
    assert jnp.allclose(out, ref, atol=1e-2, rtol=1e-2), float(jnp.max(jnp.abs(out - ref)))

    print("KERNEL_OK")
</pallas_src>

<mosaic_0001>
module attributes {stable_mosaic.version = 11 : i64} {
  func.func @conv1x1_sigmoid_kernel(%arg0: i32, %arg1: memref<1x96xbf16, #tpu.memory_space<vmem>>, %arg2: memref<2304x96xbf16, #tpu.memory_space<vmem>>, %arg3: memref<1x2304xf32, #tpu.memory_space<vmem>>, %arg4: memref<1x2304xf32, #tpu.memory_space<vmem>>) attributes {dimension_semantics = [#tpu.dimension_semantics<parallel>], iteration_bounds = array<i64: 1>, scalar_prefetch = 0 : i64, scratch_operands = 0 : i64, tpu.core_type = #tpu.core_type<tc>, window_params = [{pipeline_mode = #tpu.pipeline_mode<synchronous>, transform_indices = @transform_0, window_bounds = array<i64: 1, 96>}, {transform_indices = @transform_1, window_bounds = array<i64: 2304, 96>}, {transform_indices = @transform_2, window_bounds = array<i64: 1, 2304>}, {transform_indices = @transform_3, window_bounds = array<i64: 1, 2304>}]} {
    %c0 = arith.constant 0 : index
    %c0_0 = arith.constant 0 : index
    %0 = vector.load %arg1[%c0, %c0_0] : memref<1x96xbf16, #tpu.memory_space<vmem>>, vector<1x96xbf16>
    %c0_1 = arith.constant 0 : index
    %c0_2 = arith.constant 0 : index
    %1 = vector.load %arg2[%c0_1, %c0_2] : memref<2304x96xbf16, #tpu.memory_space<vmem>>, vector<2304x96xbf16>
    %cst = arith.constant dense<0.000000e+00> : vector<1x2304xf32>
    %2 = tpu.matmul %0, %1, %cst {dimension_numbers = #tpu.dot_dimension_numbers<[1], [1], [0], [0], [0, 0, 1, 0], [], []>} : vector<1x96xbf16>, vector<2304x96xbf16>, vector<1x2304xf32> -> vector<1x2304xf32>
    %c0_3 = arith.constant 0 : index
    %c0_4 = arith.constant 0 : index
    %3 = vector.load %arg3[%c0_3, %c0_4] : memref<1x2304xf32, #tpu.memory_space<vmem>>, vector<1x2304xf32>
    %4 = arith.addf %2, %3 : vector<1x2304xf32>
    %5 = arith.negf %4 : vector<1x2304xf32>
    %6 = math.exp %5 : vector<1x2304xf32>
    %cst_5 = arith.constant 1.000000e+00 : f32
    %7 = vector.broadcast %cst_5 : f32 to vector<1x2304xf32>
    %8 = arith.addf %7, %6 : vector<1x2304xf32>
    %9 = arith.divf %7, %8 : vector<1x2304xf32>
    %c0_6 = arith.constant 0 : index
    %c0_7 = arith.constant 0 : index
    %10 = vector.load %arg4[%c0_6, %c0_7] : memref<1x2304xf32, #tpu.memory_space<vmem>>, vector<1x2304xf32>
    tpu.vector_store %arg4[%c0_6, %c0_7], %9 {strides = array<i32>} : memref<1x2304xf32, #tpu.memory_space<vmem>>, vector<1x2304xf32>,
    return
  }
  func.func @transform_0(%arg0: i32) -> (i32, i32) {
    %c0_i32 = arith.constant 0 : i32
    %c0_i32_0 = arith.constant 0 : i32
    %c0_i32_1 = arith.constant 0 : i32
    return %c0_i32, %c0_i32_0 : i32, i32
  }
  func.func @transform_1(%arg0: i32) -> (i32, i32) {
    %c0_i32 = arith.constant 0 : i32
    %c0_i32_0 = arith.constant 0 : i32
    return %arg0, %c0_i32 : i32, i32
  }
  func.func @transform_2(%arg0: i32) -> (i32, i32) {
    %c0_i32 = arith.constant 0 : i32
    %c0_i32_0 = arith.constant 0 : i32
    return %c0_i32, %arg0 : i32, i32
  }
  func.func @transform_3(%arg0: i32) -> (i32, i32) {
    %c0_i32 = arith.constant 0 : i32
    %c0_i32_0 = arith.constant 0 : i32
    return %c0_i32, %arg0 : i32, i32
  }
}

</mosaic_0001>

<bundles_post_ra>
// kernel: tpu_custom_call.1
= control target key start
LH: loop header
LB: loop body
LE: loop exit
PB: predicated region body
PF: predicated region fallthrough
CT: control target
= control target key end

     0   :  { %vm1066_vm0 = vcmask 785408   ;;  %s4062_s0 = inlined_call_operand.vmem [shape: bf16[1,96], index: 0, kind: input, shape index: {}]   ;;  %s4063_s1 = inlined_call_operand.vmem [shape: bf16[2304,96], index: 1, kind: input, shape index: {}]   ;;  %s4064_s2 = inlined_call_operand.vmem [shape: f32[1,2304], index: 2, kind: input, shape index: {}]   ;;  %s4065_s3 = inlined_call_operand.hbm [shape: f32[1,2304], index: 3, kind: output, shape index: {}]  }
   0x1   :  { %v2778_v0 = vld [vmem:[%s4063_s1 + $0x38] sm:$0xff]  ;;  %v2777_v8 = vld [vmem:[%s4063_s1 + $0x30] sm:$0xff] }
   0x2   :  { %v2786_v1 = vld [vmem:[%s4063_s1 + $0x78] sm:$0xff]  ;;  %v1092_v4 = vsel %vm1066_vm0, %v2778_v0, 0  ;;  %v2785_v9 = vld [vmem:[%s4063_s1 + $0x70] sm:$0xff] }
   0x3   :  { %v2794_v2 = vld [vmem:[%s4063_s1 + $0xb8] sm:$0xff]  ;;  %v1116_v5 = vsel %vm1066_vm0, %v2786_v1, 0  ;;  %1502 = vmatpush.bf16.xpose.msra.mxu0 %v1092_v4  ;;  %v2793_v10 = vld [vmem:[%s4063_s1 + $0xb0] sm:$0xff] }
   0x4   :  { %v2802_v3 = vld [vmem:[%s4063_s1 + $0xf8] sm:$0xff]  ;;  %v1140_v6 = vsel %vm1066_vm0, %v2794_v2, 0  ;;  %1515 = vmatpush.bf16.xpose.msra.mxu1 %v1116_v5  ;;  %v2801_v11 = vld [vmem:[%s4063_s1 + $0xf0] sm:$0xff] }
   0x5   :  { %v1164_v7 = vsel %vm1066_vm0, %v2802_v3, 0  ;;  %1528 = vmatpush.bf16.xpose.msra.mxu2 %v1140_v6 }
   0x6   :  { %1541 = vmatpush.bf16.xpose.msra.mxu3 %v1164_v7 }
   0x7   :  { %8 = vsyncpa [#allocation3], 0  ;;  %v1089_v12 = vsel %vm1066_vm0, %v2777_v8, 0  ;;  %v1113_v13 = vsel %vm1066_vm0, %v2785_v9, 0  ;;  %v1137_v14 = vsel %vm1066_vm0, %v2793_v10, 0  ;;  %v1161_v15 = vsel %vm1066_vm0, %v2801_v11, 0 }
   0x8   :  { %v2776_v16 = vld [vmem:[%s4063_s1 + $0x28] sm:$0xff]  ;;  %v2775_v24 = vld [vmem:[%s4063_s1 + $0x20] sm:$0xff]  ;;  %v2774_v32 = vld [vmem:[%s4063_s1 + $0x18] sm:$0xff]  ;;  %s2150_s14 = sshll.u32 %s4065_s3, 4  ;;  %s2151_s14 = int_to_ptr.hbm [resolvable:$true] %s2150_s14 }
   0x9   :  { %v2784_v17 = vld [vmem:[%s4063_s1 + $0x68] sm:$0xff]  ;;  %v1086_v20 = vsel %vm1066_vm0, %v2776_v16, 0  ;;  %v2783_v25 = vld [vmem:[%s4063_s1 + $0x60] sm:$0xff]  ;;  %v1083_v28 = vsel %vm1066_vm0, %v2775_v24, 0  ;;  %v2782_v33 = vld [vmem:[%s4063_s1 + $0x58] sm:$0xff]  ;;  %v1080_v36 = vsel %vm1066_vm0, %v2774_v32, 0 }
   0xa   :  { %v2792_v18 = vld [vmem:[%s4063_s1 + $0xa8] sm:$0xff]  ;;  %v1110_v21 = vsel %vm1066_vm0, %v2784_v17, 0  ;;  %v2791_v26 = vld [vmem:[%s4063_s1 + $0xa0] sm:$0xff]  ;;  %v1107_v29 = vsel %vm1066_vm0, %v2783_v25, 0  ;;  %v2790_v34 = vld [vmem:[%s4063_s1 + $0x98] sm:$0xff]  ;;  %v1104_v37 = vsel %vm1066_vm0, %v2782_v33, 0 }
   0xb   :  { %1503 = vmatpush.bf16.xpose.msra.mxu0 %v1089_v12  ;;  %v2800_v19 = vld [vmem:[%s4063_s1 + $0xe8] sm:$0xff]  ;;  %v1134_v22 = vsel %vm1066_vm0, %v2792_v18, 0  ;;  %v2799_v27 = vld [vmem:[%s4063_s1 + $0xe0] sm:$0xff]  ;;  %v1131_v30 = vsel %vm1066_vm0, %v2791_v26, 0  ;;  %v2798_v35 = vld [vmem:[%s4063_s1 + $0xd8] sm:$0xff]  ;;  %v1128_v38 = vsel %vm1066_vm0, %v2790_v34, 0 }
   0xc   :  { %1516 = vmatpush.bf16.xpose.msra.mxu1 %v1113_v13  ;;  %v1158_v23 = vsel %vm1066_vm0, %v2800_v19, 0  ;;  %v1155_v31 = vsel %vm1066_vm0, %v2799_v27, 0  ;;  %v1152_v39 = vsel %vm1066_vm0, %v2798_v35, 0  ;;  %v2773_v40 = vld [vmem:[%s4063_s1 + $0x10] sm:$0xff]  ;;  %v2772_v48 = vld [vmem:[%s4063_s1 + $0x8] sm:$0xff]  ;;  %v2771_v56 = vld [vmem:[%s4063_s1] sm:$0xff] }
   0xd   :  { %1529 = vmatpush.bf16.xpose.msra.mxu2 %v1137_v14  ;;  %v2781_v41 = vld [vmem:[%s4063_s1 + $0x50] sm:$0xff]  ;;  %v1077_v44 = vsel %vm1066_vm0, %v2773_v40, 0  ;;  %v2780_v49 = vld [vmem:[%s4063_s1 + $0x48] sm:$0xff]  ;;  %v1074_v52 = vsel %vm1066_vm0, %v2772_v48, 0  ;;  %v2779_v57 = vld [vmem:[%s4063_s1 + $0x40] sm:$0xff]  ;;  %v1071_v0 = vsel %vm1066_vm0, %v2771_v56, 0 }
   0xe   :  { %1542 = vmatpush.bf16.xpose.msra.mxu3 %v1161_v15  ;;  %v2789_v42 = vld [vmem:[%s4063_s1 + $0x90] sm:$0xff]  ;;  %v1101_v45 = vsel %vm1066_vm0, %v2781_v41, 0  ;;  %v2788_v50 = vld [vmem:[%s4063_s1 + $0x88] sm:$0xff]  ;;  %v1098_v53 = vsel %vm1066_vm0, %v2780_v49, 0  ;;  %v2787_v58 = vld [vmem:[%s4063_s1 + $0x80] sm:$0xff]  ;;  %v1095_v1 = vsel %vm1066_vm0, %v2779_v57, 0 }
   0xf   :  { %v2797_v43 = vld [vmem:[%s4063_s1 + $0xd0] sm:$0xff]  ;;  %v1125_v46 = vsel %vm1066_vm0, %v2789_v42, 0  ;;  %v2796_v51 = vld [vmem:[%s4063_s1 + $0xc8] sm:$0xff]  ;;  %v1122_v54 = vsel %vm1066_vm0, %v2788_v50, 0  ;;  %v2795_v59 = vld [vmem:[%s4063_s1 + $0xc0] sm:$0xff]  ;;  %v1119_v2 = vsel %vm1066_vm0, %v2787_v58, 0 }
  0x10   :  { %v1149_v47 = vsel %vm1066_vm0, %v2797_v43, 0  ;;  %v1146_v55 = vsel %vm1066_vm0, %v2796_v51, 0  ;;  %v2810_v60 = vld [vmem:[%s4063_s1 + $0x138] sm:$0xff]  ;;  %v1143_v3 = vsel %vm1066_vm0, %v2795_v59, 0  ;;  %v2809_v8 = vld [vmem:[%s4063_s1 + $0x130] sm:$0xff]  ;;  %v2808_v17 = vld [vmem:[%s4063_s1 + $0x128] sm:$0xff] }
  0x11   :  { %v2818_v61 = vld [vmem:[%s4063_s1 + $0x178] sm:$0xff]  ;;  %v1188_v4 = vsel %vm1066_vm0, %v2810_v60, 0  ;;  %v2817_v9 = vld [vmem:[%s4063_s1 + $0x170] sm:$0xff]  ;;  %v3195_v12 = vld [vmem:[%s4062_s0] sm:$0x1]  ;;  %v1185_v13 = vsel %vm1066_vm0, %v2809_v8, 0 }
  0x12   :  { %v2826_v62 = vld [vmem:[%s4063_s1 + $0x1b8] sm:$0xff]  ;;  %v1212_v5 = vsel %vm1066_vm0, %v2818_v61, 0  ;;  %v2825_v10 = vld [vmem:[%s4063_s1 + $0x1b0] sm:$0xff]  ;;  %v1209_v14 = vsel %vm1066_vm0, %v2817_v9, 0  ;;  %v2816_v18 = vld [vmem:[%s4063_s1 + $0x168] sm:$0xff] }
  0x13   :  { %1504 = vmatpush.bf16.xpose.msra.mxu0 %v1086_v20  ;;  %v2834_v63 = vld [vmem:[%s4063_s1 + $0x1f8] sm:$0xff]  ;;  %v1236_v6 = vsel %vm1066_vm0, %v2826_v62, 0  ;;  %v2833_v11 = vld [vmem:[%s4063_s1 + $0x1f0] sm:$0xff]  ;;  %v1233_v15 = vsel %vm1066_vm0, %v2825_v10, 0  ;;  %v2824_v19 = vld [vmem:[%s4063_s1 + $0x1a8] sm:$0xff] }
  0x14   :  { %1517 = vmatpush.bf16.xpose.msra.mxu1 %v1110_v21  ;;  %v1260_v7 = vsel %vm1066_vm0, %v2834_v63, 0  ;;  %v1257_v16 = vsel %vm1066_vm0, %v2833_v11, 0  ;;  %v2832_v20 = vld [vmem:[%s4063_s1 + $0x1e8] sm:$0xff]  ;;  %v1182_v21 = vsel %vm1066_vm0, %v2808_v17, 0  ;;  %v2807_v25 = vld [vmem:[%s4063_s1 + $0x120] sm:$0xff]  ;;  %v2806_v33 = vld [vmem:[%s4063_s1 + $0x118] sm:$0xff] }
  0x15   :  { %1530 = vmatpush.bf16.xpose.msra.mxu2 %v1134_v22  ;;  %v1206_v22 = vsel %vm1066_vm0, %v2816_v18, 0  ;;  %v1254_v24 = vsel %vm1066_vm0, %v2832_v20, 0  ;;  %v2815_v26 = vld [vmem:[%s4063_s1 + $0x160] sm:$0xff]  ;;  %v2814_v34 = vld [vmem:[%s4063_s1 + $0x158] sm:$0xff]  ;;  %v2805_v41 = vld [vmem:[%s4063_s1 + $0x110] sm:$0xff] }
  0x16   :  { %1543 = vmatpush.bf16.xpose.msra.mxu3 %v1158_v23  ;;  %v1230_v23 = vsel %vm1066_vm0, %v2824_v19, 0  ;;  %v2823_v27 = vld [vmem:[%s4063_s1 + $0x1a0] sm:$0xff]  ;;  %v2822_v35 = vld [vmem:[%s4063_s1 + $0x198] sm:$0xff]  ;;  %v2813_v42 = vld [vmem:[%s4063_s1 + $0x150] sm:$0xff] }
  0x17   :  { %v2821_v43 = vld [vmem:[%s4063_s1 + $0x190] sm:$0xff]  ;;  %v2804_v49 = vld [vmem:[%s4063_s1 + $0x108] sm:$0xff]  ;;  %v2803_v57 = vld [vmem:[%s4063_s1 + $0x100] sm:$0xff] }
  0x18   :  { %v2812_v50 = vld [vmem:[%s4063_s1 + $0x148] sm:$0xff]  ;;  %v2811_v58 = vld [vmem:[%s4063_s1 + $0x140] sm:$0xff]  ;;  %v2842_v61 = vld [vmem:[%s4063_s1 + $0x238] sm:$0xff] }
  0x19   :  { %v2820_v51 = vld [vmem:[%s4063_s1 + $0x188] sm:$0xff]  ;;  %v2819_v59 = vld [vmem:[%s4063_s1 + $0x180] sm:$0xff]  ;;  %v2850_v62 = vld [vmem:[%s4063_s1 + $0x278] sm:$0xff] }
  0x1a   :  { %v2827_v60 = vld [vmem:[%s4063_s1 + $0x1c0] sm:$0xff]  ;;  %v2858_v63 = vld [vmem:[%s4063_s1 + $0x2b8] sm:$0xff]  ;;  %v2841_v9 = vld [vmem:[%s4063_s1 + $0x230] sm:$0xff] }
  0x1b   :  { %1505 = vmatpush.bf16.xpose.msra.mxu0 %v1083_v28  ;;  %v2831_v28 = vld [vmem:[%s4063_s1 + $0x1e0] sm:$0xff]  ;;  %v2849_v10 = vld [vmem:[%s4063_s1 + $0x270] sm:$0xff]  ;;  %v2840_v18 = vld [vmem:[%s4063_s1 + $0x228] sm:$0xff] }
  0x1c   :  { %1518 = vmatpush.bf16.xpose.msra.mxu1 %v1107_v29  ;;  %v1179_v29 = vsel %vm1066_vm0, %v2807_v25, 0  ;;  %v1251_v32 = vsel %vm1066_vm0, %v2831_v28, 0  ;;  %v2857_v11 = vld [vmem:[%s4063_s1 + $0x2b0] sm:$0xff]  ;;  %v2848_v19 = vld [vmem:[%s4063_s1 + $0x268] sm:$0xff]  ;;  %v2855_v28 = vld [vmem:[%s4063_s1 + $0x2a0] sm:$0xff] }
  0x1d   :  { %1531 = vmatpush.bf16.xpose.msra.mxu2 %v1131_v30  ;;  %v1203_v30 = vsel %vm1066_vm0, %v2815_v26, 0  ;;  %v2856_v20 = vld [vmem:[%s4063_s1 + $0x2a8] sm:$0xff]  ;;  %v2839_v26 = vld [vmem:[%s4063_s1 + $0x220] sm:$0xff] }
  0x1e   :  { %1544 = vmatpush.bf16.xpose.msra.mxu3 %v1155_v31  ;;  %v1227_v31 = vsel %vm1066_vm0, %v2823_v27, 0  ;;  %v2847_v27 = vld [vmem:[%s4063_s1 + $0x260] sm:$0xff] }
  0x23   :  { %1506 = vmatpush.bf16.xpose.msra.mxu0 %v1080_v36  ;;  %v2830_v36 = vld [vmem:[%s4063_s1 + $0x1d8] sm:$0xff] }
  0x24   :  { %1519 = vmatpush.bf16.xpose.msra.mxu1 %v1104_v37  ;;  %v1176_v37 = vsel %vm1066_vm0, %v2806_v33, 0  ;;  %v1248_v40 = vsel %vm1066_vm0, %v2830_v36, 0  ;;  %v2854_v36 = vld [vmem:[%s4063_s1 + $0x298] sm:$0xff] }
  0x25   :  { %1532 = vmatpush.bf16.xpose.msra.mxu2 %v1128_v38  ;;  %v1200_v38 = vsel %vm1066_vm0, %v2814_v34, 0  ;;  %v2838_v34 = vld [vmem:[%s4063_s1 + $0x218] sm:$0xff] }
  0x26   :  { %1545 = vmatpush.bf16.xpose.msra.mxu3 %v1152_v39  ;;  %v1224_v39 = vsel %vm1066_vm0, %v2822_v35, 0  ;;  %v2846_v35 = vld [vmem:[%s4063_s1 + $0x258] sm:$0xff] }
  0x2b   :  { %1507 = vmatpush.bf16.xpose.msra.mxu0 %v1077_v44  ;;  %v2829_v44 = vld [vmem:[%s4063_s1 + $0x1d0] sm:$0xff] }
  0x2c   :  { %1520 = vmatpush.bf16.xpose.msra.mxu1 %v1101_v45  ;;  %v1173_v45 = vsel %vm1066_vm0, %v2805_v41, 0  ;;  %v1245_v48 = vsel %vm1066_vm0, %v2829_v44, 0  ;;  %v2853_v44 = vld [vmem:[%s4063_s1 + $0x290] sm:$0xff] }
  0x2d   :  { %1533 = vmatpush.bf16.xpose.msra.mxu2 %v1125_v46  ;;  %v1197_v46 = vsel %vm1066_vm0, %v2813_v42, 0  ;;  %v2837_v42 = vld [vmem:[%s4063_s1 + $0x210] sm:$0xff] }
  0x2e   :  { %1546 = vmatpush.bf16.xpose.msra.mxu3 %v1149_v47  ;;  %v1221_v47 = vsel %vm1066_vm0, %v2821_v43, 0  ;;  %v2845_v43 = vld [vmem:[%s4063_s1 + $0x250] sm:$0xff] }
  0x33   :  { %1508 = vmatpush.bf16.xpose.msra.mxu0 %v1074_v52  ;;  %v2828_v52 = vld [vmem:[%s4063_s1 + $0x1c8] sm:$0xff] }
  0x34   :  { %1521 = vmatpush.bf16.xpose.msra.mxu1 %v1098_v53  ;;  %v1170_v53 = vsel %vm1066_vm0, %v2804_v49, 0  ;;  %v1242_v56 = vsel %vm1066_vm0, %v2828_v52, 0  ;;  %v2852_v52 = vld [vmem:[%s4063_s1 + $0x288] sm:$0xff] }
  0x35   :  { %1534 = vmatpush.bf16.xpose.msra.mxu2 %v1122_v54  ;;  %v1194_v54 = vsel %vm1066_vm0, %v2812_v50, 0  ;;  %v2836_v50 = vld [vmem:[%s4063_s1 + $0x208] sm:$0xff] }
  0x36   :  { %1547 = vmatpush.bf16.xpose.msra.mxu3 %v1146_v55  ;;  %v1218_v55 = vsel %vm1066_vm0, %v2820_v51, 0  ;;  %v2844_v51 = vld [vmem:[%s4063_s1 + $0x248] sm:$0xff] }
  0x3b   :  { %1509 = vmatpush.bf16.xpose.msra.mxu0 %v1071_v0  ;;  %v2866_v0 = vld [vmem:[%s4063_s1 + $0x2f8] sm:$0xff] }
  0x3c   :  { %1522 = vmatpush.bf16.xpose.msra.mxu1 %v1095_v1  ;;  %v1167_v1 = vsel %vm1066_vm0, %v2803_v57, 0  ;;  %v1356_v8 = vsel %vm1066_vm0, %v2866_v0, 0  ;;  %v2890_v0 = vld [vmem:[%s4063_s1 + $0x3b8] sm:$0xff] }
  0x3d   :  { %1535 = vmatpush.bf16.xpose.msra.mxu2 %v1119_v2  ;;  %v1191_v2 = vsel %vm1066_vm0, %v2811_v58, 0  ;;  %v2835_v58 = vld [vmem:[%s4063_s1 + $0x200] sm:$0xff] }
  0x3e   :  { %1548 = vmatpush.bf16.xpose.msra.mxu3 %v1143_v3  ;;  %v1215_v3 = vsel %vm1066_vm0, %v2819_v59, 0  ;;  %v2843_v59 = vld [vmem:[%s4063_s1 + $0x240] sm:$0xff] }
  0x42   :  { %2735 = vmatmul.msk.bf16.vlgmr.msra.gmra.mxu0 %vm1066_vm0, %v3195_v12 }
  0x43   :  { %1554 = vmatpush.bf16.xpose.msrb.mxu0 %v1188_v4  ;;  %2736 = vmatmul.msk.bf16.vlgmr.msra.gmra.mxu1 %vm1066_vm0, %v3195_v12  ;;  %v1239_v4 = vsel %vm1066_vm0, %v2827_v60, 0  ;;  %v2851_v60 = vld [vmem:[%s4063_s1 + $0x280] sm:$0xff] }
  0x44   :  { %1567 = vmatpush.bf16.xpose.msrb.mxu1 %v1212_v5  ;;  %2737 = vmatmul.msk.bf16.vlgmr.msra.gmra.mxu2 %vm1066_vm0, %v3195_v12  ;;  %v1284_v5 = vsel %vm1066_vm0, %v2842_v61, 0  ;;  %v2859_v61 = vld [vmem:[%s4063_s1 + $0x2c0] sm:$0xff] }
  0x45   :  { %1580 = vmatpush.bf16.xpose.msrb.mxu2 %v1236_v6  ;;  %2738 = vmatmul.msk.bf16.vlgmr.msra.gmra.mxu3 %vm1066_vm0, %v3195_v12  ;;  %v1308_v6 = vsel %vm1066_vm0, %v2850_v62, 0  ;;  %v2874_v62 = vld [vmem:[%s4063_s1 + $0x338] sm:$0xff] }
  0x46   :  { %1593 = vmatpush.bf16.xpose.msrb.mxu3 %v1260_v7  ;;  %v1332_v7 = vsel %vm1066_vm0, %v2858_v63, 0  ;;  %v2882_v63 = vld [vmem:[%s4063_s1 + $0x378] sm:$0xff] }
  0x4b   :  { %1555 = vmatpush.bf16.xpose.msrb.mxu0 %v1185_v13  ;;  %v2865_v13 = vld [vmem:[%s4063_s1 + $0x2f0] sm:$0xff] }
  0x4c   :  { %1568 = vmatpush.bf16.xpose.msrb.mxu1 %v1209_v14  ;;  %v1281_v14 = vsel %vm1066_vm0, %v2841_v9, 0  ;;  %v1353_v17 = vsel %vm1066_vm0, %v2865_v13, 0  ;;  %v2889_v13 = vld [vmem:[%s4063_s1 + $0x3b0] sm:$0xff] }
  0x4d   :  { %1581 = vmatpush.bf16.xpose.msrb.mxu2 %v1233_v15  ;;  %v1305_v15 = vsel %vm1066_vm0, %v2849_v10, 0  ;;  %v2873_v10 = vld [vmem:[%s4063_s1 + $0x330] sm:$0xff] }
  0x4e   :  { %1594 = vmatpush.bf16.xpose.msrb.mxu3 %v1257_v16  ;;  %v1329_v16 = vsel %vm1066_vm0, %v2857_v11, 0  ;;  %v2881_v11 = vld [vmem:[%s4063_s1 + $0x370] sm:$0xff] }
  0x53   :  { %1556 = vmatpush.bf16.xpose.msrb.mxu0 %v1182_v21  ;;  %v2864_v21 = vld [vmem:[%s4063_s1 + $0x2e8] sm:$0xff] }
  0x54   :  { %1569 = vmatpush.bf16.xpose.msrb.mxu1 %v1206_v22  ;;  %v1278_v22 = vsel %vm1066_vm0, %v2840_v18, 0  ;;  %v1350_v25 = vsel %vm1066_vm0, %v2864_v21, 0  ;;  %v2888_v21 = vld [vmem:[%s4063_s1 + $0x3a8] sm:$0xff] }
  0x55   :  { %1582 = vmatpush.bf16.xpose.msrb.mxu2 %v1230_v23  ;;  %v1302_v23 = vsel %vm1066_vm0, %v2848_v19, 0  ;;  %v2872_v19 = vld [vmem:[%s4063_s1 + $0x328] sm:$0xff] }
  0x56   :  { %1595 = vmatpush.bf16.xpose.msrb.mxu3 %v1254_v24  ;;  %v1326_v24 = vsel %vm1066_vm0, %v2856_v20, 0  ;;  %v2880_v20 = vld [vmem:[%s4063_s1 + $0x368] sm:$0xff] }
  0x5b   :  { %1557 = vmatpush.bf16.xpose.msrb.mxu0 %v1179_v29  ;;  %v2863_v29 = vld [vmem:[%s4063_s1 + $0x2e0] sm:$0xff] }
  0x5c   :  { %1570 = vmatpush.bf16.xpose.msrb.mxu1 %v1203_v30  ;;  %v1275_v30 = vsel %vm1066_vm0, %v2839_v26, 0  ;;  %v1347_v33 = vsel %vm1066_vm0, %v2863_v29, 0 }
  0x5d   :  { %1583 = vmatpush.bf16.xpose.msrb.mxu2 %v1227_v31  ;;  %v1299_v31 = vsel %vm1066_vm0, %v2847_v27, 0  ;;  %v2871_v27 = vld [vmem:[%s4063_s1 + $0x320] sm:$0xff] }
  0x5e   :  { %1596 = vmatpush.bf16.xpose.msrb.mxu3 %v1251_v32  ;;  %v1323_v32 = vsel %vm1066_vm0, %v2855_v28, 0  ;;  %v2879_v28 = vld [vmem:[%s4063_s1 + $0x360] sm:$0xff] }
  0x63   :  { %1558 = vmatpush.bf16.xpose.msrb.mxu0 %v1176_v37  ;;  %v2862_v37 = vld [vmem:[%s4063_s1 + $0x2d8] sm:$0xff] }
  0x64   :  { %1571 = vmatpush.bf16.xpose.msrb.mxu1 %v1200_v38  ;;  %v1272_v38 = vsel %vm1066_vm0, %v2838_v34, 0  ;;  %v1344_v41 = vsel %vm1066_vm0, %v2862_v37, 0 }
  0x65   :  { %1584 = vmatpush.bf16.xpose.msrb.mxu2 %v1224_v39  ;;  %v1296_v39 = vsel %vm1066_vm0, %v2846_v35, 0 }
  0x66   :  { %1597 = vmatpush.bf16.xpose.msrb.mxu3 %v1248_v40  ;;  %v1320_v40 = vsel %vm1066_vm0, %v2854_v36, 0 }
  0x6b   :  { %1559 = vmatpush.bf16.xpose.msrb.mxu0 %v1173_v45  ;;  %v2861_v45 = vld [vmem:[%s4063_s1 + $0x2d0] sm:$0xff] }
  0x6c   :  { %1572 = vmatpush.bf16.xpose.msrb.mxu1 %v1197_v46  ;;  %v1269_v46 = vsel %vm1066_vm0, %v2837_v42, 0  ;;  %v1341_v49 = vsel %vm1066_vm0, %v2861_v45, 0  ;;  %v2886_v42 = vld [vmem:[%s4063_s1 + $0x398] sm:$0xff] }
  0x6d   :  { %1585 = vmatpush.bf16.xpose.msrb.mxu2 %v1221_v47  ;;  %v1293_v47 = vsel %vm1066_vm0, %v2845_v43, 0  ;;  %v2894_v43 = vld [vmem:[%s4063_s1 + $0x3d8] sm:$0xff] }
  0x6e   :  { %1598 = vmatpush.bf16.xpose.msrb.mxu3 %v1245_v48  ;;  %v1317_v48 = vsel %vm1066_vm0, %v2853_v44, 0 }
  0x73   :  { %1560 = vmatpush.bf16.xpose.msrb.mxu0 %v1170_v53  ;;  %v2860_v53 = vld [vmem:[%s4063_s1 + $0x2c8] sm:$0xff] }
  0x74   :  { %1573 = vmatpush.bf16.xpose.msrb.mxu1 %v1194_v54  ;;  %v1266_v54 = vsel %vm1066_vm0, %v2836_v50, 0  ;;  %v1338_v57 = vsel %vm1066_vm0, %v2860_v53, 0  ;;  %v2869_v50 = vld [vmem:[%s4063_s1 + $0x310] sm:$0xff] }
  0x75   :  { %1586 = vmatpush.bf16.xpose.msrb.mxu2 %v1218_v55  ;;  %v1290_v55 = vsel %vm1066_vm0, %v2844_v51, 0  ;;  %v2877_v51 = vld [vmem:[%s4063_s1 + $0x350] sm:$0xff] }
  0x76   :  { %1599 = vmatpush.bf16.xpose.msrb.mxu3 %v1242_v56  ;;  %v1314_v56 = vsel %vm1066_vm0, %v2852_v52, 0  ;;  %v2885_v53 = vld [vmem:[%s4063_s1 + $0x390] sm:$0xff] }
  0x7b   :  { %1561 = vmatpush.bf16.xpose.msrb.mxu0 %v1167_v1  ;;  %v2898_v1 = vld [vmem:[%s4063_s1 + $0x3f8] sm:$0xff] }
  0x7c   :  { %1574 = vmatpush.bf16.xpose.msrb.mxu1 %v1191_v2  ;;  %v1263_v2 = vsel %vm1066_vm0, %v2835_v58, 0  ;;  %v1452_v9 = vsel %vm1066_vm0, %v2898_v1, 0  ;;  %v1413_v58 = vsel %vm1066_vm0, %v2885_v53, 0  ;;  %v2892_v1 = vld [vmem:[%s4063_s1 + $0x3c8] sm:$0xff] }
  0x7d   :  { %1587 = vmatpush.bf16.xpose.msrb.mxu2 %v1215_v3  ;;  %v1287_v3 = vsel %vm1066_vm0, %v2843_v59, 0 }
  0x7e   :  { %1600 = vmatpush.bf16.xpose.msrb.mxu3 %v1239_v4  ;;  %v1311_v4 = vsel %vm1066_vm0, %v2851_v60, 0 }
  0x82   :  { %2739 = vmatmul.msk.bf16.vlgmr.msrb.gmra.mxu0 %vm1066_vm0, %v3195_v12 }
  0x83   :  { %1606 = vmatpush.bf16.xpose.msra.mxu0 %v1284_v5  ;;  %2740 = vmatmul.msk.bf16.vlgmr.msrb.gmra.mxu1 %vm1066_vm0, %v3195_v12  ;;  %v1335_v5 = vsel %vm1066_vm0, %v2859_v61, 0  ;;  %v2868_v61 = vld [vmem:[%s4063_s1 + $0x308] sm:$0xff] }
  0x84   :  { %1619 = vmatpush.bf16.xpose.msra.mxu1 %v1308_v6  ;;  %2741 = vmatmul.msk.bf16.vlgmr.msrb.gmra.mxu2 %vm1066_vm0, %v3195_v12  ;;  %v1380_v6 = vsel %vm1066_vm0, %v2874_v62, 0  ;;  %v2876_v62 = vld [vmem:[%s4063_s1 + $0x348] sm:$0xff] }
  0x85   :  { %1632 = vmatpush.bf16.xpose.msra.mxu2 %v1332_v7  ;;  %2742 = vmatmul.msk.bf16.vlgmr.msrb.gmra.mxu3 %vm1066_vm0, %v3195_v12  ;;  %v1404_v7 = vsel %vm1066_vm0, %v2882_v63, 0 }
  0x86   :  { %1645 = vmatpush.bf16.xpose.msra.mxu3 %v1356_v8  ;;  %v1428_v8 = vsel %vm1066_vm0, %v2890_v0, 0  ;;  %v2884_v0 = vld [vmem:[%s4063_s1 + $0x388] sm:$0xff] }
  0x8b   :  { %1607 = vmatpush.bf16.xpose.msra.mxu0 %v1281_v14  ;;  %v2897_v14 = vld [vmem:[%s4063_s1 + $0x3f0] sm:$0xff] }
  0x8c   :  { %1620 = vmatpush.bf16.xpose.msra.mxu1 %v1305_v15  ;;  %v1377_v15 = vsel %vm1066_vm0, %v2873_v10, 0  ;;  %v1449_v18 = vsel %vm1066_vm0, %v2897_v14, 0  ;;  %v2867_v14 = vld [vmem:[%s4063_s1 + $0x300] sm:$0xff] }
  0x8d   :  { %1633 = vmatpush.bf16.xpose.msra.mxu2 %v1329_v16  ;;  %v1401_v16 = vsel %vm1066_vm0, %v2881_v11, 0 }
  0x8e   :  { %1646 = vmatpush.bf16.xpose.msra.mxu3 %v1353_v17  ;;  %v1425_v17 = vsel %vm1066_vm0, %v2889_v13, 0 }
  0x93   :  { %1608 = vmatpush.bf16.xpose.msra.mxu0 %v1278_v22  ;;  %v2896_v22 = vld [vmem:[%s4063_s1 + $0x3e8] sm:$0xff] }
  0x94   :  { %1621 = vmatpush.bf16.xpose.msra.mxu1 %v1302_v23  ;;  %v1374_v23 = vsel %vm1066_vm0, %v2872_v19, 0  ;;  %v1446_v26 = vsel %vm1066_vm0, %v2896_v22, 0  ;;  %v1359_v22 = vsel %vm1066_vm0, %v2867_v14, 0 }
  0x95   :  { %1634 = vmatpush.bf16.xpose.msra.mxu2 %v1326_v24  ;;  %v1398_v24 = vsel %vm1066_vm0, %v2880_v20, 0  ;;  %v2906_v20 = vld [vmem:[%s4063_s1 + $0x438] sm:$0xff] }
  0x96   :  { %1647 = vmatpush.bf16.xpose.msra.mxu3 %v1350_v25  ;;  %v1422_v25 = vsel %vm1066_vm0, %v2888_v21, 0  ;;  %v2914_v21 = vld [vmem:[%s4063_s1 + $0x478] sm:$0xff] }
  0x9b   :  { %1609 = vmatpush.bf16.xpose.msra.mxu0 %v1275_v30  ;;  %v2887_v30 = vld [vmem:[%s4063_s1 + $0x3a0] sm:$0xff] }
  0x9c   :  { %1622 = vmatpush.bf16.xpose.msra.mxu1 %v1299_v31  ;;  %v2895_v31 = vld [vmem:[%s4063_s1 + $0x3e0] sm:$0xff]  ;;  %v1419_v36 = vsel %vm1066_vm0, %v2887_v30, 0 }
  0x9d   :  { %1635 = vmatpush.bf16.xpose.msra.mxu2 %v1323_v32  ;;  %v1371_v32 = vsel %vm1066_vm0, %v2871_v27, 0  ;;  %v1443_v37 = vsel %vm1066_vm0, %v2895_v31, 0  ;;  %v1476_v27 = vsel %vm1066_vm0, %v2906_v20, 0  ;;  %v2905_v31 = vld [vmem:[%s4063_s1 + $0x430] sm:$0xff] }
  0x9e   :  { %1648 = vmatpush.bf16.xpose.msra.mxu3 %v1347_v33  ;;  %v1395_v33 = vsel %vm1066_vm0, %v2879_v28, 0  ;;  %v1500_v28 = vsel %vm1066_vm0, %v2914_v21, 0  ;;  %v2902_v21 = vld [vmem:[%s4063_s1 + $0x418] sm:$0xff] }
  0xa3   :  { %1610 = vmatpush.bf16.xpose.msra.mxu0 %v1272_v38  ;;  %v2870_v38 = vld [vmem:[%s4063_s1 + $0x318] sm:$0xff] }
  0xa4   :  { %1623 = vmatpush.bf16.xpose.msra.mxu1 %v1296_v39  ;;  %v2878_v39 = vld [vmem:[%s4063_s1 + $0x358] sm:$0xff]  ;;  %v1368_v44 = vsel %vm1066_vm0, %v2870_v38, 0 }
  0xa5   :  { %1636 = vmatpush.bf16.xpose.msra.mxu2 %v1320_v40  ;;  %v1392_v45 = vsel %vm1066_vm0, %v2878_v39, 0 }
  0xa6   :  { %1649 = vmatpush.bf16.xpose.msra.mxu3 %v1344_v41 }
  0xab   :  { %1611 = vmatpush.bf16.xpose.msra.mxu0 %v1269_v46 }
  0xac   :  { %1624 = vmatpush.bf16.xpose.msra.mxu1 %v1293_v47 }
  0xad   :  { %1637 = vmatpush.bf16.xpose.msra.mxu2 %v1317_v48  ;;  %v1416_v48 = vsel %vm1066_vm0, %v2886_v42, 0  ;;  %v2912_v42 = vld [vmem:[%s4063_s1 + $0x468] sm:$0xff] }
  0xae   :  { %1650 = vmatpush.bf16.xpose.msra.mxu3 %v1341_v49  ;;  %v1440_v49 = vsel %vm1066_vm0, %v2894_v43, 0 }
  0xb3   :  { %1612 = vmatpush.bf16.xpose.msra.mxu0 %v1266_v54  ;;  %v2893_v54 = vld [vmem:[%s4063_s1 + $0x3d0] sm:$0xff] }
  0xb4   :  { %1625 = vmatpush.bf16.xpose.msra.mxu1 %v1290_v55  ;;  %v3544_v55 = vld [vmem:[%s4064_s2] sm:$0xff]  ;;  %v1437_v59 = vsel %vm1066_vm0, %v2893_v54, 0 }
  0xb5   :  { %1638 = vmatpush.bf16.xpose.msra.mxu2 %v1314_v56  ;;  %v1365_v56 = vsel %vm1066_vm0, %v2869_v50, 0  ;;  %v1031_v60 = vperm.slane %v3544_v55, 1  ;;  %v1032_v63 = vperm.slane %v3544_v55, 2  ;;  %v1030_v10 = vperm.slane %v3544_v55, 0 }
  0xb6   :  { %1651 = vmatpush.bf16.xpose.msra.mxu3 %v1338_v57  ;;  %v1389_v57 = vsel %vm1066_vm0, %v2877_v51, 0  ;;  %v1034_v43 = vperm.slane %v3544_v55, 4 }
  0xbb   :  { %1613 = vmatpush.bf16.xpose.msra.mxu0 %v1263_v2  ;;  %v1033_v2 = vperm.slane %v3544_v55, 3 }
  0xbc   :  { %1626 = vmatpush.bf16.xpose.msra.mxu1 %v1287_v3 }
  0xbd   :  { %1639 = vmatpush.bf16.xpose.msra.mxu2 %v1311_v4  ;;  %v1362_v4 = vsel %vm1066_vm0, %v2868_v61, 0  ;;  %v1036_v61 = vperm.slane %v3544_v55, 6 }
  0xbe   :  { %1652 = vmatpush.bf16.xpose.msra.mxu3 %v1335_v5  ;;  %v1386_v5 = vsel %vm1066_vm0, %v2876_v62, 0  ;;  %v1037_v62 = vperm.slane %v3544_v55, 7 }
  0xbf   :  { %v1511_v40 = vpop.f32.mrf.mxu0 }
  0xc0   :  { %v1524_v29 = vpop.f32.mrf.mxu1  ;;  %v1512_v19 = vadd.f32 %v1511_v40, %v1030_v10 }
  0xc1   :  { %v1525_v3 = vadd.f32 %v1524_v29, %v1031_v60 }
  0xc2   :  { %2743 = vmatmul.msk.bf16.vlgmr.msra.gmra.mxu0 %vm1066_vm0, %v3195_v12 }
  0xc3   :  { %1658 = vmatpush.bf16.xpose.msrb.mxu0 %v1380_v6  ;;  %2744 = vmatmul.msk.bf16.vlgmr.msra.gmra.mxu1 %vm1066_vm0, %v3195_v12  ;;  %v2754_v11 = vmul.f32 -1.442695, %v1525_v3 }
  0xc4   :  { %1671 = vmatpush.bf16.xpose.msrb.mxu1 %v1404_v7  ;;  %2745 = vmatmul.msk.bf16.vlgmr.msra.gmra.mxu2 %vm1066_vm0, %v3195_v12  ;;  %v1410_v7 = vsel %vm1066_vm0, %v2884_v0, 0 }
  0xc5   :  { %1684 = vmatpush.bf16.xpose.msrb.mxu2 %v1428_v8  ;;  %2746 = vmatmul.msk.bf16.vlgmr.msra.gmra.mxu3 %vm1066_vm0, %v3195_v12  ;;  %v1434_v8 = vsel %vm1066_vm0, %v2892_v1, 0  ;;  %2916 = vpow2.f32 %v2754_v11 }
  0xc6   :  { %1697 = vmatpush.bf16.xpose.msrb.mxu3 %v1452_v9 }
  0xc7   :  { %v1537_v34 = vpop.f32.mrf.mxu2  ;;  %v1513_v52 = vpop.f32.mrf.mxu0 }
  0xc8   :  { %v1550_v35 = vpop.f32.mrf.mxu3  ;;  %v1526_v41 = vpop.f32.mrf.mxu1  ;;  %v1538_v6 = vadd.f32 %v1537_v34, %v1032_v63 }
  0xc9   :  { %v1551_v9 = vadd.f32 %v1550_v35, %v1033_v2  ;;  %v2904_v41 = vld [vmem:[%s4063_s1 + $0x428] sm:$0xff] }
  0xca   :  { %v2755_v13 = vmul.f32 -1.442695, %v1538_v6 }
  0xcb   :  { %1659 = vmatpush.bf16.xpose.msrb.mxu0 %v1377_v15  ;;  %v2875_v15 = vld [vmem:[%s4063_s1 + $0x340] sm:$0xff]  ;;  %v2917_v29 = vpop.eup %2916 }
  0xcc   :  { %1672 = vmatpush.bf16.xpose.msrb.mxu1 %v1401_v16  ;;  %v2756_v16 = vmul.f32 -1.442695, %v1551_v9  ;;  %2918 = vpow2.f32 %v2755_v13  ;;  %v3600_v34 = vadd.f32 1.0, %v2917_v29 }
  0xcd   :  { %1685 = vmatpush.bf16.xpose.msrb.mxu2 %v1425_v17  ;;  %v2883_v17 = vld [vmem:[%s4063_s1 + $0x380] sm:$0xff] }
  0xce   :  { %1698 = vmatpush.bf16.xpose.msrb.mxu3 %v1449_v18  ;;  %v2891_v18 = vld [vmem:[%s4063_s1 + $0x3c0] sm:$0xff]  ;;  %2920 = vpow2.f32 %v2756_v16  ;;  %vm1828_vm1 = vweird.f32 %v3600_v34  ;;  %v1832_v13 = vand.u32 2147483647, %v3600_v34  ;;  %v1834_v14 = vand.u32 2147483648, %v3600_v34 }
  0xcf   :  { %v1539_v46 = vpop.f32.mrf.mxu2 }
  0xd0   :  { %v1552_v47 = vpop.f32.mrf.mxu3  ;;  %v1494_v46 = vsel %vm1066_vm0, %v2912_v42, 0  ;;  %vm3710_vm9 = vcmp.eq.f32.partialorder %v1832_v13, 8.507059e+37 }
  0xd2   :  { %v2919_v30 = vpop.eup %2918 }
  0xd3   :  { %1660 = vmatpush.bf16.xpose.msrb.mxu0 %v1374_v23  ;;  %v1383_v23 = vsel %vm1066_vm0, %v2875_v15, 0  ;;  %v3602_v35 = vadd.f32 1.0, %v2919_v30 }
  0xd4   :  { %1673 = vmatpush.bf16.xpose.msrb.mxu1 %v1398_v24  ;;  %v1407_v24 = vsel %vm1066_vm0, %v2883_v17, 0 }
  0xd5   :  { %1686 = vmatpush.bf16.xpose.msrb.mxu2 %v1422_v25  ;;  %v1431_v25 = vsel %vm1066_vm0, %v2891_v18, 0  ;;  %vm1843_vm2 = vweird.f32 %v3602_v35  ;;  %v1847_v15 = vand.u32 2147483647, %v3602_v35  ;;  %v1849_v20 = vand.u32 2147483648, %v3602_v35 }
  0xd6   :  { %1699 = vmatpush.bf16.xpose.msrb.mxu3 %v1446_v26  ;;  %v2753_v26 = vmul.f32 -1.442695, %v1512_v19 }
  0xd7   :  { %vm3714_vm10 = vcmp.eq.f32.partialorder %v1847_v15, 8.507059e+37 }
  0xd8   :  { %2922 = vpow2.f32 %v2753_v26 }
  0xd9   :  { %2924 = vrcp.f32 %v3600_v34 }
  0xda   :  { %2926 = vrcp.f32 %v3602_v35 }
  0xdb   :  { %1661 = vmatpush.bf16.xpose.msrb.mxu0 %v1371_v32  ;;  %v2913_v32 = vld [vmem:[%s4063_s1 + $0x470] sm:$0xff] }
  0xdc   :  { %1674 = vmatpush.bf16.xpose.msrb.mxu1 %v1395_v33  ;;  %v2921_v33 = vpop.eup %2920  ;;  %v1497_v38 = vsel %vm1066_vm0, %v2913_v32, 0 }
  0xdd   :  { %1687 = vmatpush.bf16.xpose.msrb.mxu2 %v1419_v36  ;;  %v3604_v36 = vadd.f32 1.0, %v2921_v33  ;;  %v1464_v33 = vsel %vm1066_vm0, %v2902_v21, 0 }
  0xde   :  { %1700 = vmatpush.bf16.xpose.msrb.mxu3 %v1443_v37  ;;  %v1473_v37 = vsel %vm1066_vm0, %v2905_v31, 0  ;;  %v2923_v39 = vpop.eup %2922 }
  0xdf   :  { %2928 = vrcp.f32 %v3604_v36  ;;  %v3619_v40 = vadd.f32 1.0, %v2923_v39  ;;  %vm1858_vm4 = vweird.f32 %v3604_v36  ;;  %v1862_v30 = vand.u32 2147483647, %v3604_v36 }
  0xe0   :  { %v1864_v31 = vand.u32 2147483648, %v3604_v36  ;;  %v1835_v39 = vor.u32 1.1754944e-38, %v1834_v14 }
  0xe1   :  { %2930 = vrcp.f32 %v3619_v40  ;;  %vm3732_vm12 = vcmp.eq.f32.partialorder %v1862_v30, 8.507059e+37  ;;  %vm1813_vm13 = vweird.f32 %v3619_v40 }
  0xe3   :  { %1662 = vmatpush.bf16.xpose.msrb.mxu0 %v1368_v44  ;;  %v3629_v44 = vpop.eup %2924 }
  0xe4   :  { %1675 = vmatpush.bf16.xpose.msrb.mxu1 %v1392_v45  ;;  %v1470_v45 = vsel %vm1066_vm0, %v2904_v41, 0  ;;  %v3634_v47 = vpop.eup %2926  ;;  %v1824_v51 = vmul.f32 %v3629_v44, %v3600_v34  ;;  %vm1829_vm3 = vweird.f32 %v3629_v44 }
  0xe5   :  { %1688 = vmatpush.bf16.xpose.msrb.mxu2 %v1416_v48  ;;  %v3636_v50 = vpop.eup %2928  ;;  %v1839_v54 = vmul.f32 %v3634_v47, %v3602_v35  ;;  %vm1844_vm5 = vweird.f32 %v3634_v47  ;;  %vm3685_vm6 = vmor %vm1828_vm1, %vm1829_vm3  ;;  %v1850_v35 = vor.u32 1.1754944e-38, %v1849_v20 }
  0xe6   :  { %1701 = vmatpush.bf16.xpose.msrb.mxu3 %v1440_v49  ;;  %v1854_v60 = vmul.f32 %v3636_v50, %v3604_v36  ;;  %v1825_v0 = vsub.f32 1.0, %v1824_v51  ;;  %vm1859_vm7 = vweird.f32 %v3636_v50  ;;  %vm3701_vm8 = vmor %vm1843_vm2, %vm1844_vm5  ;;  %v1817_v36 = vand.u32 2147483647, %v3619_v40 }
  0xe7   :  { %v3652_v63 = vpop.eup %2930  ;;  %v1840_v1 = vsub.f32 1.0, %v1839_v54  ;;  %vm3722_vm11 = vmor %vm1858_vm4, %vm1859_vm7 }
  0xe8   :  { %v1855_v6 = vsub.f32 1.0, %v1854_v60  ;;  %v1826_v11 = vmul.f32 %v3629_v44, %v1825_v0  ;;  %vm1814_vm14 = vweird.f32 %v3652_v63  ;;  %vm3785_vm5 = vcmp.eq.f32.partialorder %v1817_v36, 8.507059e+37 }
  0xe9   :  { %v1841_v19 = vmul.f32 %v3634_v47, %v1840_v1  ;;  %vm3775_vm1 = vmor %vm1813_vm13, %vm1814_vm14 }
  0xeb   :  { %1663 = vmatpush.bf16.xpose.msrb.mxu0 %v1365_v56  ;;  %v1842_v32 = vadd.f32 %v3634_v47, %v1841_v19 }
  0xec   :  { %1676 = vmatpush.bf16.xpose.msrb.mxu1 %v1389_v57 }
  0xed   :  { %1689 = vmatpush.bf16.xpose.msrb.mxu2 %v1413_v58  ;;  %v2903_v58 = vld [vmem:[%s4063_s1 + $0x420] sm:$0xff] }
  0xee   :  { %1702 = vmatpush.bf16.xpose.msrb.mxu3 %v1437_v59  ;;  %v2911_v59 = vld [vmem:[%s4063_s1 + $0x460] sm:$0xff] }
  0xf3   :  { %1664 = vmatpush.bf16.xpose.msrb.mxu0 %v1362_v4  ;;  %v1467_v4 = vsel %vm1066_vm0, %v2903_v58, 0 }
  0xf4   :  { %1677 = vmatpush.bf16.xpose.msrb.mxu1 %v1386_v5  ;;  %v1491_v5 = vsel %vm1066_vm0, %v2911_v59, 0 }
  0xf5   :  { %1690 = vmatpush.bf16.xpose.msrb.mxu2 %v1410_v7  ;;  %v1809_v7 = vmul.f32 %v3652_v63, %v3619_v40 }
  0xf6   :  { %1703 = vmatpush.bf16.xpose.msrb.mxu3 %v1434_v8 }
  0xfb   :  { %1665 = vmatpush.bf16.xpose.msrb.mxu0 %v1359_v22  ;;  %v2910_v22 = vld [vmem:[%s4063_s1 + $0x458] sm:$0xff] }
  0xfc   :  { %1678 = vmatpush.bf16.xpose.msrb.mxu1 %v1383_v23  ;;  %v1488_v34 = vsel %vm1066_vm0, %v2910_v22, 0 }
  0xfd   :  { %1691 = vmatpush.bf16.xpose.msrb.mxu2 %v1407_v24  ;;  %v1856_v24 = vmul.f32 %v3636_v50, %v1855_v6 }
  0xfe   :  { %1704 = vmatpush.bf16.xpose.msrb.mxu3 %v1431_v25  ;;  %v1810_v25 = vsub.f32 1.0, %v1809_v7 }
  0xff   :  { %v1563_v48 = vpop.f32.mrf.mxu0  ;;  %v1857_v42 = vadd.f32 %v3636_v50, %v1856_v24 }
 0x100   :  { %v1576_v49 = vpop.f32.mrf.mxu1  ;;  %v1564_v52 = vadd.f32 %v1563_v48, %v1034_v43  ;;  %v1811_v43 = vmul.f32 %v3652_v63, %v1810_v25 }
 0x101   :  { %v1861_v60 = vsel %vm3722_vm11, %v3636_v50, %v1857_v42 }
 0x102   :  { %2747 = vmatmul.msk.bf16.vlgmr.msrb.gmra.mxu0 %vm1066_vm0, %v3195_v12  ;;  %v2757_v56 = vmul.f32 -1.442695, %v1564_v52 }
 0x103   :  { %1710 = vmatpush.bf16.xpose.msra.mxu0 %v1476_v27  ;;  %2748 = vmatmul.msk.bf16.vlgmr.msrb.gmra.mxu1 %vm1066_vm0, %v3195_v12  ;;  %v1827_v27 = vadd.f32 %v3629_v44, %v1826_v11 }
 0x104   :  { %1723 = vmatpush.bf16.xpose.msra.mxu1 %v1500_v28  ;;  %2749 = vmatmul.msk.bf16.vlgmr.msrb.gmra.mxu2 %vm1066_vm0, %v3195_v12  ;;  %2932 = vpow2.f32 %v2757_v56  ;;  %v1846_v56 = vsel %vm3701_vm8, %v3634_v47, %v1842_v32 }
 0x105   :  { %2750 = vmatmul.msk.bf16.vlgmr.msrb.gmra.mxu3 %vm1066_vm0, %v3195_v12  ;;  %v1035_v12 = vperm.slane %v3544_v55, 5  ;;  %v3792_v11 = vsel %vm3714_vm10, %v1850_v35, %v1846_v56 }
 0x107   :  { %v1577_v53 = vadd.f32 %v1576_v49, %v1035_v12  ;;  %v1589_v2 = vpop.f32.mrf.mxu2  ;;  %v1565_v55 = vpop.f32.mrf.mxu0  ;;  %v1831_v12 = vsel %vm3685_vm6, %v3629_v44, %v1827_v27  ;;  %v2901_v44 = vld [vmem:[%s4063_s1 + $0x410] sm:$0xff] }
 0x108   :  { %v1602_v3 = vpop.f32.mrf.mxu3  ;;  %v1590_v8 = vadd.f32 %v1589_v2, %v1036_v61  ;;  %v1578_v10 = vpop.f32.mrf.mxu1  ;;  %v2909_v49 = vld [vmem:[%s4063_s1 + $0x450] sm:$0xff]  ;;  %v3751_v61 = vadd.f32 %v3652_v63, %v1811_v43  ;;  %v3757_v47 = vsel %vm3710_vm9, %v1835_v39, %v1831_v12  ;;  %v1461_v2 = vsel %vm1066_vm0, %v2901_v44, 0 }
 0x109   :  { %v2758_v57 = vmul.f32 -1.442695, %v1577_v53  ;;  %v1603_v9 = vadd.f32 %v1602_v3, %v1037_v62  ;;  %v1865_v53 = vor.u32 1.1754944e-38, %v1864_v31  ;;  %v1485_v50 = vsel %vm1066_vm0, %v2909_v49, 0 }
 0x10a   :  { %v2759_v16 = vmul.f32 -1.442695, %v1590_v8  ;;  %v2933_v18 = vpop.eup %2932  ;;  %v2096_v24 = vrot.slane %v3757_v47, 7 }
 0x10b   :  { %1711 = vmatpush.bf16.xpose.msra.mxu0 %v1473_v37  ;;  %2934 = vpow2.f32 %v2758_v57  ;;  %v2760_v17 = vmul.f32 -1.442695, %v1603_v9  ;;  %v3675_v26 = vadd.f32 1.0, %v2933_v18  ;;  %v1819_v57 = vand.u32 2147483648, %v3619_v40 }
 0x10c   :  { %1724 = vmatpush.bf16.xpose.msra.mxu1 %v1497_v38  ;;  %2936 = vpow2.f32 %v2759_v16  ;;  %v1816_v16 = vsel %vm3775_vm1, %v3652_v63, %v3751_v61  ;;  %v2900_v63 = vld [vmem:[%s4063_s1 + $0x408] sm:$0xff] }
 0x10d   :  { %2938 = vpow2.f32 %v2760_v17  ;;  %vm1873_vm15 = vweird.f32 %v3675_v26  ;;  %v1877_v3 = vand.u32 2147483647, %v3675_v26  ;;  %v1820_v13 = vor.u32 1.1754944e-38, %v1819_v57  ;;  %v2899_v57 = vld [vmem:[%s4063_s1 + $0x400] sm:$0xff] }
 0x10e   :  { %2940 = vrcp.f32 %v3675_v26  ;;  %v3807_v17 = vsel %vm3732_vm12, %v1865_v53, %v1861_v60  ;;  %v1458_v41 = vsel %vm1066_vm0, %v2900_v63, 0  ;;  %v2097_v53 = vrot.slane %v3792_v11, 6  ;;  %v2988_v11 = vld [vmem:[%s4062_s0] sm:$0x1] }
 0x10f   :  { %v1591_v37 = vpop.f32.mrf.mxu2  ;;  %vm3810_vm7 = vcmp.eq.f32.partialorder %v1877_v3, 8.507059e+37  ;;  %v1821_v35 = vsel %vm3785_vm5, %v1820_v13, %v1816_v16  ;;  %vm2117_vm5 = vcmask 1044484   ;;  %v1455_v3 = vsel %vm1066_vm0, %v2899_v57, 0  ;;  %v3908_v13 = vld [vmem:[%s4064_s2 + $0x8] sm:$0xff] }
 0x110   :  { %v1604_v38 = vpop.f32.mrf.mxu3  ;;  %v1039_v14 = vperm.slane %v3908_v13, 1 }
 0x111   :  { %v2935_v23 = vpop.eup %2934 }
 0x112   :  { %v3679_v28 = vadd.f32 1.0, %v2935_v23  ;;  %v2937_v51 = vpop.eup %2936  ;;  %v2908_v23 = vld [vmem:[%s4063_s1 + $0x448] sm:$0xff] }
 0x113   :  { %1712 = vmatpush.bf16.xpose.msra.mxu0 %v1470_v45  ;;  %v2939_v54 = vpop.eup %2938  ;;  %v3743_v58 = vadd.f32 1.0, %v2937_v51  ;;  %v1482_v42 = vsel %vm1066_vm0, %v2908_v23, 0  ;;  %v1041_v45 = vperm.slane %v3908_v13, 3 }
 0x114   :  { %1725 = vmatpush.bf16.xpose.msra.mxu1 %v1494_v46  ;;  %2942 = vrcp.f32 %v3679_v28  ;;  %v3745_v59 = vpop.eup %2940  ;;  %v3753_v62 = vadd.f32 1.0, %v2939_v54  ;;  %vm1888_vm3 = vweird.f32 %v3679_v28  ;;  %v1892_v9 = vand.u32 2147483647, %v3679_v28 }
 0x115   :  { %v1869_v1 = vmul.f32 %v3745_v59, %v3675_v26  ;;  %2944 = vrcp.f32 %v3743_v58  ;;  %vm1874_vm2 = vweird.f32 %v3745_v59  ;;  %v1894_v10 = vand.u32 2147483648, %v3679_v28 }
 0x116   :  { %2946 = vrcp.f32 %v3753_v62  ;;  %vm3796_vm6 = vmor %vm1873_vm15, %vm1874_vm2  ;;  %vm3830_vm9 = vcmp.eq.f32.partialorder %v1892_v9, 8.507059e+37  ;;  %vm1903_vm10 = vweird.f32 %v3743_v58  ;;  %v1907_v30 = vand.u32 2147483647, %v3743_v58 }
 0x117   :  { %v1870_v7 = vsub.f32 1.0, %v1869_v1  ;;  %v1895_v27 = vor.u32 1.1754944e-38, %v1894_v10  ;;  %v1909_v31 = vand.u32 2147483648, %v3743_v58  ;;  %v1922_v38 = vand.u32 2147483647, %v3753_v62 }
 0x118   :  { %v1924_v39 = vand.u32 2147483648, %v3753_v62  ;;  %vm1918_vm12 = vweird.f32 %v3753_v62  ;;  %vm3863_vm15 = vcmp.eq.f32.partialorder %v1907_v30, 8.507059e+37 }
 0x119   :  { %v1871_v55 = vmul.f32 %v3745_v59, %v1870_v7  ;;  %v1910_v46 = vor.u32 1.1754944e-38, %v1909_v31  ;;  %vm3872_vm2 = vcmp.eq.f32.partialorder %v1922_v38, 8.507059e+37 }
 0x11a   :  { %v3759_v0 = vpop.eup %2942  ;;  %v1925_v56 = vor.u32 1.1754944e-38, %v1924_v39 }
 0x11b   :  { %1713 = vmatpush.bf16.xpose.msra.mxu0 %v1467_v4  ;;  %v1879_v4 = vand.u32 2147483648, %v3675_v26  ;;  %vm1889_vm4 = vweird.f32 %v3759_v0  ;;  %v2945_v18 = vpop.eup %2944  ;;  %v1872_v19 = vadd.f32 %v3745_v59, %v1871_v55 }
 0x11c   :  { %1726 = vmatpush.bf16.xpose.msra.mxu1 %v1491_v5  ;;  %v1884_v5 = vmul.f32 %v3759_v0, %v3679_v28  ;;  %vm3818_vm8 = vmor %vm1888_vm3, %vm1889_vm4  ;;  %v1899_v28 = vmul.f32 %v2945_v18, %v3743_v58  ;;  %v2947_v29 = vpop.eup %2946  ;;  %vm1904_vm11 = vweird.f32 %v2945_v18  ;;  %v2907_v58 = vld [vmem:[%s4063_s1 + $0x440] sm:$0xff]  ;;  %vm4066_vm3 = vcmask 1040384  }
 0x11d   :  { %v1880_v21 = vor.u32 1.1754944e-38, %v1879_v4  ;;  %v1876_v32 = vsel %vm3796_vm6, %v3745_v59, %v1872_v19  ;;  %v1914_v37 = vmul.f32 %v2947_v29, %v3753_v62  ;;  %vm1919_vm13 = vweird.f32 %v2947_v29  ;;  %vm3853_vm14 = vmor %vm1903_vm10, %vm1904_vm11 }
 0x11e   :  { %v1885_v8 = vsub.f32 1.0, %v1884_v5  ;;  %vm3868_vm1 = vmor %vm1918_vm12, %vm1919_vm13  ;;  %v2098_v59 = vrot.slane %v3807_v17, 5  ;;  %vm2113_vm4 = vcmask 1042434   ;;  %vm2115_vm6 = vcmask 1041408  }
 0x11f   :  { %v1915_v12 = vsub.f32 1.0, %v1914_v37  ;;  %v1881_v48 = vsel %vm3810_vm7, %v1880_v21, %v1876_v32  ;;  %v1479_v4 = vsel %vm1066_vm0, %v2907_v58, 0  ;;  %vm2119_vm7 = vcmask 1046534  }
 0x120   :  { %v1886_v15 = vmul.f32 %v3759_v0, %v1885_v8  ;;  %v2099_v62 = vrot.slane %v1881_v48, 4  ;;  %v2114_v7 = vsel %vm2113_vm4, %v2097_v53, %v2098_v59 }
 0x121   :  { %v1916_v52 = vmul.f32 %v2947_v29, %v1915_v12 }
 0x122   :  { %v1887_v25 = vadd.f32 %v3759_v0, %v1886_v15 }
 0x123   :  { %1714 = vmatpush.bf16.xpose.msra.mxu0 %v1464_v33  ;;  %v1917_v61 = vadd.f32 %v2947_v29, %v1916_v52 }
 0x124   :  { %1727 = vmatpush.bf16.xpose.msra.mxu1 %v1488_v34  ;;  %v1891_v33 = vsel %vm3818_vm8, %v3759_v0, %v1887_v25  ;;  %v1900_v34 = vsub.f32 1.0, %v1899_v28  ;;  %vm2121_vm8 = vcmask 1045508  }
 0x125   :  { %v1896_v44 = vsel %vm3830_vm9, %v1895_v27, %v1891_v33  ;;  %v1921_v1 = vsel %vm3868_vm1, %v2947_v29, %v1917_v61  ;;  %vm2123_vm9 = vcmask 1043456  }
 0x126   :  { %v1901_v43 = vmul.f32 %v2945_v18, %v1900_v34  ;;  %v2100_v47 = vrot.slane %v1896_v44, 3  ;;  %v1926_v5 = vsel %vm3872_vm2, %v1925_v56, %v1921_v1 }
 0x127   :  { %v2102_v6 = vrot.slane %v1926_v5, 1 }
 0x128   :  { %v1902_v49 = vadd.f32 %v2945_v18, %v1901_v43  ;;  %v2118_v8 = vsel %vm2117_vm5, %v2099_v62, %v2100_v47 }
 0x12a   :  { %v1906_v60 = vsel %vm3853_vm14, %v2945_v18, %v1902_v49  ;;  %v1038_v18 = vperm.slane %v3908_v13, 0 }
 0x12b   :  { %1715 = vmatpush.bf16.xpose.msra.mxu0 %v1461_v2  ;;  %v1911_v0 = vsel %vm3863_vm15, %v1910_v46, %v1906_v60 }
 0x12c   :  { %1728 = vmatpush.bf16.xpose.msra.mxu1 %v1485_v50  ;;  %v2101_v2 = vrot.slane %v1911_v0, 2  ;;  %v2112_v50 = vsel %vm4066_vm3, %v1821_v35, %v2096_v24 }
 0x12d   :  { %v2116_v10 = vsel %vm2115_vm6, %v2112_v50, %v2114_v7  ;;  %v1042_v50 = vperm.slane %v3908_v13, 4 }
 0x12e   :  { %v2120_v9 = vsel %vm2119_vm7, %v2101_v2, %v2102_v6 }
 0x12f   :  { %v2122_v40 = vsel %vm2121_vm8, %v2118_v8, %v2120_v9 }
 0x130   :  { %v2124_v55 = vsel %vm2123_vm9, %v2116_v10, %v2122_v40  ;;  %v1044_v10 = vperm.slane %v3908_v13, 6  ;;  %v1045_v40 = vperm.slane %v3908_v13, 7 }
 0x131   :  { %2136 = vst [vmem:[#allocation2] sm:$0xff] %v2124_v55 }
 0x133   :  { %1716 = vmatpush.bf16.xpose.msra.mxu0 %v1458_v41 }
 0x134   :  { %1729 = vmatpush.bf16.xpose.msra.mxu1 %v1482_v42  ;;  %v1040_v42 = vperm.slane %v3908_v13, 2 }
 0x13b   :  { %1717 = vmatpush.bf16.xpose.msra.mxu0 %v1455_v3  ;;  %v1043_v3 = vperm.slane %v3908_v13, 5 }
 0x13c   :  { %1730 = vmatpush.bf16.xpose.msra.mxu1 %v1479_v4 }
 0x13f   :  { %v1615_v19 = vpop.f32.mrf.mxu0 }
 0x140   :  { %v1628_v15 = vpop.f32.mrf.mxu1  ;;  %v1616_v22 = vadd.f32 %v1615_v19, %v1038_v18 }
 0x141   :  { %v1629_v16 = vadd.f32 %v1628_v15, %v1039_v14 }
 0x142   :  { %2751 = vmatmul.msk.bf16.vlgmr.msra.gmra.mxu0 %vm1066_vm0, %v2988_v11  ;;  %v2761_v23 = vmul.f32 -1.442695, %v1616_v22 }
 0x143   :  { %2752 = vmatmul.msk.bf16.vlgmr.msra.gmra.mxu1 %vm1066_vm0, %v2988_v11  ;;  %v2762_v17 = vmul.f32 -1.442695, %v1629_v16 }
 0x145   :  { %2948 = vpow2.f32 %v2762_v17 }
 0x146   :  { %2950 = vpow2.f32 %v2761_v23 }
 0x147   :  { %v1641_v20 = vpop.f32.mrf.mxu2  ;;  %v1617_v26 = vpop.f32.mrf.mxu0 }
 0x148   :  { %v1654_v21 = vpop.f32.mrf.mxu3  ;;  %v1630_v63 = vpop.f32.mrf.mxu1  ;;  %v1642_v51 = vadd.f32 %v1641_v20, %v1040_v42 }
 0x149   :  { %v1655_v53 = vadd.f32 %v1654_v21, %v1041_v45 }
 0x14a   :  { %v2763_v56 = vmul.f32 -1.442695, %v1642_v51 }
 0x14b   :  { %v2949_v24 = vpop.eup %2948  ;;  %v2764_v58 = vmul.f32 -1.442695, %v1655_v53 }
 0x14c   :  { %v1799_v25 = vadd.f32 1.0, %v2949_v24  ;;  %v2951_v29 = vpop.eup %2950 }
 0x14d   :  { %v1798_v30 = vadd.f32 1.0, %v2951_v29 }
 0x14e   :  { %2952 = vrcp.f32 %v1799_v25  ;;  %vm1948_vm0 = vweird.f32 %v1799_v25  ;;  %v1954_v41 = vand.u32 2147483648, %v1799_v25  ;;  %v1952_v12 = vand.u32 2147483647, %v1799_v25 }
 0x14f   :  { %v1643_v27 = vpop.f32.mrf.mxu2  ;;  %2954 = vrcp.f32 %v1798_v30  ;;  %v1939_v48 = vand.u32 2147483648, %v1798_v30  ;;  %vm1933_vm12 = vweird.f32 %v1798_v30  ;;  %v1937_v44 = vand.u32 2147483647, %v1798_v30 }
 0x150   :  { %v1656_v28 = vpop.f32.mrf.mxu3  ;;  %v1955_v49 = vor.u32 1.1754944e-38, %v1954_v41  ;;  %vm1953_vm14 = vcmp.eq.f32.partialorder %v1952_v12, 8.507059e+37  ;;  %2956 = vpow2.f32 %v2763_v56 }
 0x151   :  { %v1940_v54 = vor.u32 1.1754944e-38, %v1939_v48  ;;  %vm1938_vm1 = vcmp.eq.f32.partialorder %v1937_v44, 8.507059e+37  ;;  %2958 = vpow2.f32 %v2764_v58 }
 0x154   :  { %v2953_v31 = vpop.eup %2952 }
 0x155   :  { %v1944_v32 = vmul.f32 %v2953_v31, %v1799_v25  ;;  %v2955_v34 = vpop.eup %2954  ;;  %vm1949_vm10 = vweird.f32 %v2953_v31 }
 0x156   :  { %v1929_v37 = vmul.f32 %v2955_v34, %v1798_v30  ;;  %vm3914_vm11 = vmor %vm1948_vm0, %vm1949_vm10  ;;  %vm1934_vm13 = vweird.f32 %v2955_v34  ;;  %v2957_v47 = vpop.eup %2956 }
 0x157   :  { %v1945_v33 = vsub.f32 1.0, %v1944_v32  ;;  %vm1935_vm15 = vmor %vm1933_vm12, %vm1934_vm13  ;;  %v2959_v0 = vpop.eup %2958  ;;  %v3923_v1 = vadd.f32 1.0, %v2957_v47 }
 0x158   :  { %v1930_v39 = vsub.f32 1.0, %v1929_v37  ;;  %v3925_v2 = vadd.f32 1.0, %v2959_v0 }
 0x159   :  { %v1946_v38 = vmul.f32 %v2953_v31, %v1945_v33  ;;  %2960 = vrcp.f32 %v3923_v1  ;;  %vm1963_vm2 = vweird.f32 %v3923_v1  ;;  %v1967_v33 = vand.u32 2147483647, %v3923_v1 }
 0x15a   :  { %v1931_v46 = vmul.f32 %v2955_v34, %v1930_v39  ;;  %2962 = vrcp.f32 %v3925_v2  ;;  %v1969_v37 = vand.u32 2147483648, %v3923_v1  ;;  %vm1978_vm0 = vweird.f32 %v3925_v2 }
 0x15b   :  { %v1947_v43 = vadd.f32 %v2953_v31, %v1946_v38  ;;  %v1982_v38 = vand.u32 2147483647, %v3925_v2  ;;  %v1984_v42 = vand.u32 2147483648, %v3925_v2 }
 0x15c   :  { %v1932_v36 = vadd.f32 %v2955_v34, %v1931_v46  ;;  %v1970_v58 = vor.u32 1.1754944e-38, %v1969_v37 }
 0x15d   :  { %v1951_v52 = vsel %vm3914_vm11, %v2953_v31, %v1947_v43  ;;  %v1985_v47 = vor.u32 1.1754944e-38, %v1984_v42 }
 0x15e   :  { %v1956_v57 = vsel %vm1953_vm14, %v1955_v49, %v1951_v52  ;;  %v1936_v59 = vsel %vm1935_vm15, %v2955_v34, %v1932_v36 }
 0x15f   :  { %v2103_v60 = vrot.slane %v1956_v57, 7  ;;  %v1941_v61 = vsel %vm1938_vm1, %v1940_v54, %v1936_v59  ;;  %v3933_v55 = vpop.eup %2960 }
 0x160   :  { %v3935_v11 = vpop.eup %2962  ;;  %v1959_v20 = vmul.f32 %v3933_v55, %v3923_v1  ;;  %vm1964_vm10 = vweird.f32 %v3933_v55 }
 0x161   :  { %v3921_v62 = vsel %vm4066_vm3, %v1941_v61, %v2103_v60  ;;  %v1974_v21 = vmul.f32 %v3935_v11, %v3925_v2  ;;  %vm1979_vm11 = vweird.f32 %v3935_v11  ;;  %vm3963_vm13 = vmor %vm1963_vm2, %vm1964_vm10  ;;  %vm3977_vm2 = vcmp.eq.f32.partialorder %v1967_v33, 8.507059e+37 }
 0x162   :  { %v1960_v25 = vsub.f32 1.0, %v1959_v20  ;;  %vm3973_vm1 = vmor %vm1978_vm0, %vm1979_vm11  ;;  %vm3985_vm10 = vcmp.eq.f32.partialorder %v1982_v38, 8.507059e+37 }
 0x163   :  { %v1975_v26 = vsub.f32 1.0, %v1974_v21 }
 0x164   :  { %v1961_v30 = vmul.f32 %v3933_v55, %v1960_v25 }
 0x165   :  { %v1976_v31 = vmul.f32 %v3935_v11, %v1975_v26 }
 0x166   :  { %v1962_v45 = vadd.f32 %v3933_v55, %v1961_v30 }
 0x167   :  { %v1977_v46 = vadd.f32 %v3935_v11, %v1976_v31 }
 0x168   :  { %v1966_v60 = vsel %vm3963_vm13, %v3933_v55, %v1962_v45 }
 0x169   :  { %v1971_v20 = vsel %vm3977_vm2, %v1970_v58, %v1966_v60 }
 0x17f   :  { %v1667_v4 = vpop.f32.mrf.mxu0 }
 0x180   :  { %v1680_v5 = vpop.f32.mrf.mxu1  ;;  %v1668_v6 = vadd.f32 %v1667_v4, %v1042_v50  ;;  %v1981_v50 = vsel %vm3973_vm1, %v3935_v11, %v1977_v46 }
 0x181   :  { %v1681_v7 = vadd.f32 %v1680_v5, %v1043_v3  ;;  %v1986_v21 = vsel %vm3985_vm10, %v1985_v47, %v1981_v50 }
 0x182   :  { %v2765_v8 = vmul.f32 -1.442695, %v1668_v6  ;;  %v2105_v30 = vrot.slane %v1986_v21, 5 }
 0x183   :  { %v2766_v9 = vmul.f32 -1.442695, %v1681_v7 }
 0x184   :  { %2964 = vpow2.f32 %v2765_v8 }
 0x185   :  { %2966 = vpow2.f32 %v2766_v9 }
 0x187   :  { %v1693_v14 = vpop.f32.mrf.mxu2  ;;  %v1669_v19 = vpop.f32.mrf.mxu0 }
 0x188   :  { %v1706_v15 = vpop.f32.mrf.mxu3  ;;  %v1694_v16 = vadd.f32 %v1693_v14, %v1044_v10  ;;  %v1682_v18 = vpop.f32.mrf.mxu1 }
 0x189   :  { %v1707_v17 = vadd.f32 %v1706_v15, %v1045_v40 }
 0x18a   :  { %v2767_v22 = vmul.f32 -1.442695, %v1694_v16  ;;  %v2965_v63 = vpop.eup %2964 }
 0x18b   :  { %v2768_v13 = vmul.f32 -1.442695, %v1707_v17  ;;  %v2967_v23 = vpop.eup %2966  ;;  %v1802_v24 = vadd.f32 1.0, %v2965_v63 }
 0x18c   :  { %2968 = vpow2.f32 %v2767_v22  ;;  %v1803_v27 = vadd.f32 1.0, %v2967_v23 }
 0x18d   :  { %2970 = vpow2.f32 %v2768_v13  ;;  %vm1993_vm12 = vweird.f32 %v1802_v24  ;;  %v1997_v48 = vand.u32 2147483647, %v1802_v24  ;;  %v1999_v44 = vand.u32 2147483648, %v1802_v24 }
 0x18e   :  { %2972 = vrcp.f32 %v1802_v24  ;;  %vm2008_vm15 = vweird.f32 %v1803_v27  ;;  %v2012_v54 = vand.u32 2147483647, %v1803_v27  ;;  %v2014_v56 = vand.u32 2147483648, %v1803_v27 }
 0x18f   :  { %2974 = vrcp.f32 %v1803_v27  ;;  %v1695_v28 = vpop.f32.mrf.mxu2  ;;  %vm3998_vm11 = vcmp.eq.f32.partialorder %v1997_v48, 8.507059e+37  ;;  %v2000_v5 = vor.u32 1.1754944e-38, %v1999_v44  ;;  %v306_v44 = vld [vmem:[%s4064_s2 + $0x10] sm:$0x3]  ;;  %s3015_s2 = smov [#allocation2]  }
 0x190   :  { %v1708_v29 = vpop.f32.mrf.mxu3  ;;  %v2015_v9 = vor.u32 1.1754944e-38, %v2014_v56  ;;  %v1047_v51 = vperm.slane %v306_v44, 1  ;;  %s2148_s11 = sshll.u32 %s3015_s2, 4  ;;  %s2149_s11 = int_to_ptr.vmem [resolvable:$true] %s2148_s11 }
 0x191   :  { %v2104_v29 = vrot.slane %v1971_v20, 6 }
 0x192   :  { %v2969_v32 = vpop.eup %2968 }
 0x193   :  { %v2971_v34 = vpop.eup %2970  ;;  %v3948_v39 = vadd.f32 1.0, %v2969_v32 }
 0x194   :  { %v3950_v41 = vpop.eup %2972  ;;  %v3955_v43 = vadd.f32 1.0, %v2971_v34 }
 0x195   :  { %v2975_v12 = vpop.eup %2974  ;;  %v1989_v35 = vmul.f32 %v3950_v41, %v1802_v24  ;;  %2976 = vrcp.f32 %v3948_v39  ;;  %vm1994_vm14 = vweird.f32 %v3950_v41  ;;  %v2027_v55 = vand.u32 2147483647, %v3948_v39 }
 0x196   :  { %v2004_v49 = vmul.f32 %v2975_v12, %v1803_v27  ;;  %2978 = vrcp.f32 %v3955_v43  ;;  %vm2009_vm3 = vweird.f32 %v2975_v12  ;;  %vm3990_vm0 = vmor %vm1993_vm12, %vm1994_vm14  ;;  %vm4008_vm12 = vcmp.eq.f32.partialorder %v2012_v54, 8.507059e+37 }
 0x197   :  { %v1990_v52 = vsub.f32 1.0, %v1989_v35  ;;  %vm4004_vm13 = vmor %vm2008_vm15, %vm2009_vm3  ;;  %vm2023_vm14 = vweird.f32 %v3948_v39  ;;  %v2029_v11 = vand.u32 2147483648, %v3948_v39  ;;  %v2042_v18 = vand.u32 2147483647, %v3955_v43 }
 0x198   :  { %v2005_v36 = vsub.f32 1.0, %v2004_v49  ;;  %v2044_v19 = vand.u32 2147483648, %v3955_v43  ;;  %vm2038_vm3 = vweird.f32 %v3955_v43  ;;  %vm2028_vm2 = vcmp.eq.f32.partialorder %v2027_v55, 8.507059e+37 }
 0x199   :  { %v1991_v59 = vmul.f32 %v3950_v41, %v1990_v52  ;;  %v2030_v23 = vor.u32 1.1754944e-38, %v2029_v11  ;;  %v1046_v49 = vperm.slane %v306_v44, 0 }
 0x19a   :  { %v2006_v1 = vmul.f32 %v2975_v12, %v2005_v36  ;;  %v2045_v28 = vor.u32 1.1754944e-38, %v2044_v19 }
 0x19b   :  { %v2977_v2 = vpop.eup %2976  ;;  %v1992_v3 = vadd.f32 %v3950_v41, %v1991_v59 }
 0x19c   :  { %v2007_v7 = vadd.f32 %v2975_v12, %v2006_v1  ;;  %v2019_v10 = vmul.f32 %v2977_v2, %v3948_v39  ;;  %v2979_v40 = vpop.eup %2978  ;;  %vm2024_vm1 = vweird.f32 %v2977_v2 }
 0x19d   :  { %v1996_v14 = vsel %vm3990_vm0, %v3950_v41, %v1992_v3  ;;  %v2034_v17 = vmul.f32 %v2979_v40, %v3955_v43  ;;  %vm2039_vm15 = vweird.f32 %v2979_v40  ;;  %vm4032_vm0 = vmor %vm2023_vm14, %vm2024_vm1  ;;  %v2126_v43 = vsel %vm2113_vm4, %v2104_v29, %v2105_v30 }
 0x19e   :  { %v2011_v15 = vsel %vm4004_vm13, %v2975_v12, %v2007_v7  ;;  %v2020_v16 = vsub.f32 1.0, %v2019_v10  ;;  %v2001_v24 = vsel %vm3998_vm11, %v2000_v5, %v1996_v14  ;;  %vm2040_vm10 = vmor %vm2038_vm3, %vm2039_vm15  ;;  %vm2043_vm13 = vcmp.eq.f32.partialorder %v2042_v18, 8.507059e+37 }
 0x19f   :  { %v2035_v13 = vsub.f32 1.0, %v2034_v17  ;;  %v2016_v25 = vsel %vm4008_vm12, %v2015_v9, %v2011_v15  ;;  %v2106_v33 = vrot.slane %v2001_v24, 4  ;;  %v2127_v46 = vsel %vm2115_vm6, %v3921_v62, %v2126_v43 }
 0x1a0   :  { %v2021_v22 = vmul.f32 %v2977_v2, %v2020_v16  ;;  %v2107_v34 = vrot.slane %v2016_v25, 3  ;;  %v2138_v14 = vlaneseq  ;;  %vm4121_vm1 = vcmask 1040384  }
 0x1a1   :  { %v2036_v27 = vmul.f32 %v2979_v40, %v2035_v13 }
 0x1a2   :  { %v2022_v26 = vadd.f32 %v2977_v2, %v2021_v22  ;;  %v2128_v12 = vsel %vm2117_vm5, %v2106_v33, %v2107_v34  ;;  %vm2140_vm14 = vcmp.lt.s32.totalorder %v2138_v14, 256 }
 0x1a3   :  { %v2037_v32 = vadd.f32 %v2979_v40, %v2036_v27 }
 0x1a4   :  { %v2026_v31 = vsel %vm4032_vm0, %v2977_v2, %v2022_v26 }
 0x1a5   :  { %v2031_v37 = vsel %vm2028_vm2, %v2030_v23, %v2026_v31  ;;  %v2041_v38 = vsel %vm2040_vm10, %v2979_v40, %v2037_v32 }
 0x1a6   :  { %v2108_v39 = vrot.slane %v2031_v37, 2  ;;  %v2046_v41 = vsel %vm2043_vm13, %v2045_v28, %v2041_v38 }
 0x1a7   :  { %v2109_v42 = vrot.slane %v2046_v41, 1 }
 0x1a9   :  { %v2129_v45 = vsel %vm2119_vm7, %v2108_v39, %v2109_v42 }
 0x1aa   :  { %v2130_v35 = vsel %vm2121_vm8, %v2128_v12, %v2129_v45 }
 0x1ab   :  { %v2131_v48 = vsel %vm2123_vm9, %v2127_v46, %v2130_v35 }
 0x1ac   :  { %2137 = vst [vmem:[#allocation2 + $0x8] sm:$0xff] %v2131_v48 }
 0x1bf   :  { %v1719_v52 = vpop.f32.mrf.mxu0 }
 0x1c0   :  { %v1732_v53 = vpop.f32.mrf.mxu1  ;;  %v1720_v36 = vadd.f32 %v1719_v52, %v1046_v49 }
 0x1c1   :  { %v1733_v54 = vadd.f32 %v1732_v53, %v1047_v51 }
 0x1c2   :  { %v2769_v56 = vmul.f32 -1.442695, %v1720_v36 }
 0x1c3   :  { %v2770_v57 = vmul.f32 -1.442695, %v1733_v54 }
 0x1c4   :  { %2980 = vpow2.f32 %v2769_v56 }
 0x1c5   :  { %2982 = vpow2.f32 %v2770_v57 }
 0x1c7   :  { %v1721_v62 = vpop.f32.mrf.mxu0 }
 0x1c8   :  { %v1734_v58 = vpop.f32.mrf.mxu1 }
 0x1ca   :  { %v2981_v59 = vpop.eup %2980 }
 0x1cb   :  { %v2983_v60 = vpop.eup %2982  ;;  %v1806_v61 = vadd.f32 1.0, %v2981_v59 }
 0x1cc   :  { %v1807_v47 = vadd.f32 1.0, %v2983_v60 }
 0x1cd   :  { %2984 = vrcp.f32 %v1806_v61  ;;  %vm2053_vm6 = vweird.f32 %v1806_v61  ;;  %v2059_v9 = vand.u32 2147483648, %v1806_v61  ;;  %v2057_v11 = vand.u32 2147483647, %v1806_v61 }
 0x1ce   :  { %2986 = vrcp.f32 %v1807_v47  ;;  %v2074_v6 = vand.u32 2147483648, %v1807_v47  ;;  %v2072_v8 = vand.u32 2147483647, %v1807_v47  ;;  %vm2068_vm7 = vweird.f32 %v1807_v47 }
 0x1cf   :  { %v2060_v18 = vor.u32 1.1754944e-38, %v2059_v9  ;;  %vm2058_vm12 = vcmp.eq.f32.partialorder %v2057_v11, 8.507059e+37 }
 0x1d0   :  { %v2075_v15 = vor.u32 1.1754944e-38, %v2074_v6  ;;  %vm2073_vm11 = vcmp.eq.f32.partialorder %v2072_v8, 8.507059e+37 }
 0x1d3   :  { %v2985_v0 = vpop.eup %2984 }
 0x1d4   :  { %v2987_v1 = vpop.eup %2986  ;;  %v2049_v2 = vmul.f32 %v2985_v0, %v1806_v61  ;;  %vm2054_vm4 = vweird.f32 %v2985_v0 }
 0x1d5   :  { %v2064_v50 = vmul.f32 %v2987_v1, %v1807_v47  ;;  %vm2069_vm5 = vweird.f32 %v2987_v1  ;;  %vm4052_vm8 = vmor %vm2053_vm6, %vm2054_vm4 }
 0x1d6   :  { %v2050_v3 = vsub.f32 1.0, %v2049_v2  ;;  %vm2070_vm9 = vmor %vm2068_vm7, %vm2069_vm5 }
 0x1d7   :  { %v2065_v4 = vsub.f32 1.0, %v2064_v50 }
 0x1d8   :  { %v2051_v5 = vmul.f32 %v2985_v0, %v2050_v3 }
 0x1d9   :  { %v2066_v7 = vmul.f32 %v2987_v1, %v2065_v4 }
 0x1da   :  { %v2052_v10 = vadd.f32 %v2985_v0, %v2051_v5 }
 0x1db   :  { %v2067_v40 = vadd.f32 %v2987_v1, %v2066_v7 }
 0x1dc   :  { %v2056_v16 = vsel %vm4052_vm8, %v2985_v0, %v2052_v10 }
 0x1dd   :  { %v2071_v17 = vsel %vm2070_vm9, %v2987_v1, %v2067_v40  ;;  %v2061_v21 = vsel %vm2058_vm12, %v2060_v18, %v2056_v16 }
 0x1de   :  { %v2076_v19 = vsel %vm2073_vm11, %v2075_v15, %v2071_v17 }
 0x1df   :  { %v2110_v20 = vrot.slane %v2076_v19, 7 }
 0x1e1   :  { %v2132_v22 = vsel %vm4121_vm1, %v2061_v21, %v2110_v20 }
 0x1e2   :  { %2142 = vst.msk [vmem:[#allocation2 + $0x10] sm:$0x3] %vm2140_vm14, %v2132_v22 }
 0x1e3   :  { %2153 = dma.vmem_to_hbm [thread:$0]  %s2149_s11, 288, %s2151_s14, [#allocation3]  }
 0x1e4   :  { %3013 = dma.done.wait [#allocation3], 288  }
 0x1e5   :  { %3014 = vsyncadd [#allocation3], 4294967008 }
 0x1e6   :  { %2158 = vsyncpa [#allocation3], 1 }

</bundles_post_ra>
